<compile_context>
chip_gen: v5e
topology: v5e:2x2
jax: 0.10.0
libtpu: 0.0.40
codegen_flags: <defaults>
</compile_context>

<pallas_src>
import functools

import jax
import jax.numpy as jnp
from jax.experimental import pallas as pl
from jax.experimental.pallas import tpu as pltpu

_GN_EPS = 1e-5  # GraphNorm eps (torch_geometric default)


def _round_up(x, m):
    return (x + m - 1) // m * m


# ----------------------- K1: mlp_sub on the coarse set (once) -----------------------
def _mlp_sub_kernel(x_sub_ref, w_ref, b_ref, g_ref, be_ref, a_ref, out_ref):
    f32 = jnp.float32
    h = jnp.dot(x_sub_ref[...], w_ref[...], preferred_element_type=f32) + b_ref[...]
    mean = jnp.mean(h, axis=0, keepdims=True)
    o = h - mean * a_ref[...]
    var = jnp.mean(o * o, axis=0, keepdims=True)
    out_ref[...] = jnp.maximum(
        g_ref[...] * o * jax.lax.rsqrt(var + _GN_EPS) + be_ref[...], 0.0)


# ----------------- K2: global GraphNorm stats for the fine (x) branch ----------------
def _fine_stats_kernel(x_ref, w_ref, b_ref, a_ref, mean_ref, istd_ref, *, n_real, tile_n):
    f32 = jnp.float32
    i = pl.program_id(0)

    @pl.when(i == 0)
    def _():
        mean_ref[...] = jnp.zeros_like(mean_ref)
        istd_ref[...] = jnp.zeros_like(istd_ref)

    h = jnp.dot(x_ref[...], w_ref[...], preferred_element_type=f32) + b_ref[...]
    # Mask zero-padded rows (they would contribute h == b and pollute the stats).
    row = jax.lax.broadcasted_iota(jnp.int32, (tile_n, 1), 0) + i * tile_n
    mask = (row < n_real).astype(f32)
    hm = h * mask
    mean_ref[...] += jnp.sum(hm, axis=0, keepdims=True)        # running sum(h)
    istd_ref[...] += jnp.sum(hm * h, axis=0, keepdims=True)    # running sum(h^2)

    @pl.when(i == pl.num_programs(0) - 1)
    def _():
        inv_n = 1.0 / float(n_real)
        s = mean_ref[...]
        ss = istd_ref[...]
        alpha = a_ref[...]
        mean = s * inv_n
        ex2 = ss * inv_n
        # Var[h - alpha*mean] = E[h^2] - mean^2 * (2*alpha - alpha^2)
        var = ex2 - mean * mean * (2.0 * alpha - alpha * alpha)
        mean_ref[...] = mean
        istd_ref[...] = jax.lax.rsqrt(jnp.maximum(var, 0.0) + _GN_EPS)


# -------------------------------- K3: main fused kernel ------------------------------
def _main_kernel(x_ref, pos_ref, pos_sub_t_ref, xsf_ref, mean_ref, istd_ref,
                 w_ref, b_ref, g_ref, be_ref, a_ref, out_ref, *, n_sub):
    f32 = jnp.float32

    # fine branch: Linear -> GraphNorm (precomputed global stats) -> ReLU
    h = jnp.dot(x_ref[...], w_ref[...], preferred_element_type=f32) + b_ref[...]
    o = h - mean_ref[...] * a_ref[...]
    x_out = jnp.maximum(g_ref[...] * o * istd_ref[...] + be_ref[...], 0.0)

    # knn_interpolate(x_sub_feat, pos_sub, pos, k=2)
    pos = pos_ref[...]                 # (TILE_N, 3)
    pos_sub_t = pos_sub_t_ref[...]     # (3, N_sub)
    tile_n = pos.shape[0]

    # exact f32 pairwise squared distances on the VPU (no MXU rounding -> stable NN picks)
    d = None
    for c in range(pos.shape[1]):      # static loop over the 3 coordinates
        diff = pos[:, c:c + 1] - pos_sub_t[c:c + 1, :]
        d = diff * diff if d is None else d + diff * diff

    col = jax.lax.broadcasted_iota(jnp.int32, (tile_n, n_sub), 1)

    # top-2 (first occurrence on ties)
    d1 = jnp.min(d, axis=1, keepdims=True)
    idx1 = jnp.min(jnp.where(d == d1, col, n_sub), axis=1, keepdims=True)
    m1 = col == idx1
    d_rest = jnp.where(m1, jnp.inf, d)
    d2 = jnp.min(d_rest, axis=1, keepdims=True)
    idx2 = jnp.min(jnp.where(d_rest == d2, col, n_sub), axis=1, keepdims=True)
    m2 = col == idx2

    # inverse-squared-distance weights (torch_geometric: 1 / clamp(d^2, 1e-16));
    # EUP reciprocals keep the divides off the VALU slots.
    w1 = pl.reciprocal(jnp.maximum(d1, 1e-16), approx=True)
    w2 = pl.reciprocal(jnp.maximum(d2, 1e-16), approx=True)

    # sparse (2 nnz / row) weight matrix, materialized densely -> MXU matmul gather
    w_mat = jnp.where(m1, w1, jnp.where(m2, w2, 0.0))         # (TILE_N, N_sub)
    num = jnp.dot(w_mat, xsf_ref[...], preferred_element_type=f32)
    x_interp = num * pl.reciprocal(w1 + w2, approx=True)

    out_ref[...] = x_out + x_interp


# ------------------------------------- wrapper ---------------------------------------
def transition_up(x, x_sub, pos, pos_sub, params, *, tile_n=512):
    """Glue (padding / transpose / slicing) in plain JAX, compute in Pallas kernels."""
    N, c_out = x.shape
    n_sub, c_in = x_sub.shape
    assert n_sub >= 2, "knn_interpolate with k=2 needs at least 2 coarse points"

    f32 = jnp.float32
    c_pad = _round_up(c_out, 128)
    c_in_pad = _round_up(c_in, 128)

    # row tiling over the fine (query) set
    tile = min(_round_up(tile_n, 8), _round_up(N, 8))
    n_pad = _round_up(N, tile)
    num_tiles = n_pad // tile

    def pad2(a, rows, cols):
        a = a.astype(f32)
        return jnp.pad(a, ((0, rows - a.shape[0]), (0, cols - a.shape[1])))

    # channel-padded parameters (zero padding keeps padded channels exactly zero)
    w_sub = pad2(params["w_sub"], c_in_pad, c_pad)
    b_sub = pad2(params["b_sub"], 1, c_pad)
    g_sub = pad2(params["g_sub"], 1, c_pad)
    be_sub = pad2(params["be_sub"], 1, c_pad)
    a_sub = pad2(params["a_sub"], 1, c_pad)
    w = pad2(params["w"], c_pad, c_pad)
    b = pad2(params["b"], 1, c_pad)
    g = pad2(params["g"], 1, c_pad)
    be = pad2(params["be"], 1, c_pad)
    a = pad2(params["a"], 1, c_pad)

    x_p = pad2(x, n_pad, c_pad)
    x_sub_p = pad2(x_sub, n_sub, c_in_pad)
    pos_p = jnp.pad(pos.astype(f32), ((0, n_pad - N), (0, 0)))
    pos_sub_t = pos_sub.astype(f32).T            # (3, N_sub): no in-kernel transpose

    vmem = pl.BlockSpec(memory_space=pltpu.MemorySpace.VMEM)
    full = lambda shape: pl.BlockSpec(shape, lambda i: (0, 0))   # VMEM-resident across grid

    # ---- K1: mlp_sub (computed once, reused by every tile of K3) ----
    x_sub_feat = pl.pallas_call(
        _mlp_sub_kernel,
        out_shape=jax.ShapeDtypeStruct((n_sub, c_pad), f32),
        in_specs=[vmem] * 6,
        out_specs=vmem,
    )(x_sub_p, w_sub, b_sub, g_sub, be_sub, a_sub)

    # ---- K2: global GraphNorm stats of (x @ W + b) over the N real rows ----
    mean, istd = pl.pallas_call(
        functools.partial(_fine_stats_kernel, n_real=N, tile_n=tile),
        out_shape=(jax.ShapeDtypeStruct((1, c_pad), f32),
                   jax.ShapeDtypeStruct((1, c_pad), f32)),
        grid=(num_tiles,),
        in_specs=[pl.BlockSpec((tile, c_pad), lambda i: (i, 0)),
                  full((c_pad, c_pad)),
                  full((1, c_pad)),
                  full((1, c_pad))],
        out_specs=(full((1, c_pad)), full((1, c_pad))),
        compiler_params=pltpu.CompilerParams(
            dimension_semantics=("arbitrary",)),      # accumulator across grid steps
    )(x_p, w, b, a)

    # ---- K3: per-tile Linear + GraphNorm-apply + ReLU, kNN interp, residual add ----
    # VMEM budget: resident coarse features/weights + double-buffered row tiles +
    # ~8 live (tile, N_sub) f32 temporaries for the kNN search; 2x headroom,
    # clamped to [32 MiB, 64 MiB] so it is safe across v5e / v6e / v7x.
    resident = (3 * n_sub + n_sub * c_pad + c_pad * c_pad + 7 * c_pad) * 4
    tile_bufs = 2 * 2 * (tile * c_pad + tile * 3 + tile * c_pad) * 4
    temps = 8 * tile * n_sub * 4
    vmem_limit = int(min(max(2 * (resident + tile_bufs + temps), 32 * 2**20), 64 * 2**20))

    out = pl.pallas_call(
        functools.partial(_main_kernel, n_sub=n_sub),
        out_shape=jax.ShapeDtypeStruct((n_pad, c_pad), f32),
        grid=(num_tiles,),
        in_specs=[pl.BlockSpec((tile, c_pad), lambda i: (i, 0)),   # x tile
                  pl.BlockSpec((tile, 3), lambda i: (i, 0)),       # pos tile
                  full((3, n_sub)),                                # pos_sub^T (resident)
                  full((n_sub, c_pad)),                            # x_sub_feat (resident)
                  full((1, c_pad)),                                # mean
                  full((1, c_pad)),                                # inv_std
                  full((c_pad, c_pad)),                            # W
                  full((1, c_pad)),                                # b
                  full((1, c_pad)),                                # gamma
                  full((1, c_pad)),                                # beta
                  full((1, c_pad))],                               # alpha
        out_specs=pl.BlockSpec((tile, c_pad), lambda i: (i, 0)),
        compiler_params=pltpu.CompilerParams(
            dimension_semantics=("parallel",),        # megacore sharding on v7x
            vmem_limit_bytes=vmem_limit),
    )(x_p, pos_p, pos_sub_t, x_sub_feat, mean, istd, w, b, g, be, a)

    return out[:N, :c_out]


# ------------------------------- pure-JAX reference ----------------------------------
def transition_up_ref(x, x_sub, pos, pos_sub, p):
    def gn_relu(h, g, be, a):
        mean = jnp.mean(h, axis=0, keepdims=True)
        o = h - mean * a
        var = jnp.mean(o * o, axis=0, keepdims=True)
        return jnp.maximum(g * o / jnp.sqrt(var + _GN_EPS) + be, 0.0)

    xs = gn_relu(x_sub @ p["w_sub"] + p["b_sub"], p["g_sub"], p["be_sub"], p["a_sub"])
    d = jnp.sum((pos[:, None, :] - pos_sub[None, :, :]) ** 2, axis=-1)
    neg_top, idx = jax.lax.top_k(-d, 2)
    dk = -neg_top
    wgt = 1.0 / jnp.maximum(dk, 1e-16)                    # (N, 2)
    gathered = xs[idx]                                    # (N, 2, C)
    y = jnp.sum(wgt[..., None] * gathered, axis=1) / jnp.sum(wgt, axis=1, keepdims=True)
    xo = gn_relu(x @ p["w"] + p["b"], p["g"], p["be"], p["a"])
    return xo + y


if __name__ == "__main__":
    # Small shapes consistent with the module: N target points, N_sub coarse points.
    N, N_SUB, C_IN, C_OUT = 16, 8, 32, 16
    key = jax.random.PRNGKey(0)
    keys = jax.random.split(key, 12)

    x = jax.random.normal(keys[0], (N, C_OUT), dtype=jnp.float32)
    x_sub = jax.random.normal(keys[1], (N_SUB, C_IN), dtype=jnp.float32)
    pos = jax.random.uniform(keys[2], (N, 3), dtype=jnp.float32)
    pos_sub = jax.random.uniform(keys[3], (N_SUB, 3), dtype=jnp.float32)

    # Deterministic synthetic parameters (Linear + GraphNorm for each MLP).
    params = {
        "w_sub": jax.random.normal(keys[4], (C_IN, C_OUT), jnp.float32) / jnp.sqrt(C_IN),
        "b_sub": 0.1 * jax.random.normal(keys[5], (1, C_OUT), jnp.float32),
        "g_sub": 1.0 + 0.1 * jax.random.normal(keys[6], (1, C_OUT), jnp.float32),
        "be_sub": 0.1 * jax.random.normal(keys[7], (1, C_OUT), jnp.float32),
        "a_sub": jnp.ones((1, C_OUT), jnp.float32),       # GraphNorm mean_scale init
        "w": jax.random.normal(keys[8], (C_OUT, C_OUT), jnp.float32) / jnp.sqrt(C_OUT),
        "b": 0.1 * jax.random.normal(keys[9], (1, C_OUT), jnp.float32),
        "g": 1.0 + 0.1 * jax.random.normal(keys[10], (1, C_OUT), jnp.float32),
        "be": 0.1 * jax.random.normal(keys[11], (1, C_OUT), jnp.float32),
        "a": jnp.ones((1, C_OUT), jnp.float32),
    }

    out = jax.block_until_ready(transition_up(x, x_sub, pos, pos_sub, params))
    ref = jax.block_until_ready(transition_up_ref(x, x_sub, pos, pos_sub, params))

    assert out.shape == (N, C_OUT), out.shape
    assert jnp.allclose(out, ref, atol=1e-2, rtol=1e-2), "mismatch vs reference"
    print("KERNEL_OK")
</pallas_src>

<mosaic_0001>
module attributes {stable_mosaic.version = 11 : i64} {
  func.func @_mlp_sub_kernel(%arg0: memref<8x128xf32, #tpu.memory_space<vmem>>, %arg1: memref<128x128xf32, #tpu.memory_space<vmem>>, %arg2: memref<1x128xf32, #tpu.memory_space<vmem>>, %arg3: memref<1x128xf32, #tpu.memory_space<vmem>>, %arg4: memref<1x128xf32, #tpu.memory_space<vmem>>, %arg5: memref<1x128xf32, #tpu.memory_space<vmem>>, %arg6: memref<8x128xf32, #tpu.memory_space<vmem>>) attributes {dimension_semantics = [], scalar_prefetch = 0 : i64, scratch_operands = 0 : i64, tpu.core_type = #tpu.core_type<tc>} {
    %c0 = arith.constant 0 : index
    %c0_0 = arith.constant 0 : index
    %0 = vector.load %arg0[%c0, %c0_0] : memref<8x128xf32, #tpu.memory_space<vmem>>, vector<8x128xf32>
    %c0_1 = arith.constant 0 : index
    %c0_2 = arith.constant 0 : index
    %1 = vector.load %arg1[%c0_1, %c0_2] : memref<128x128xf32, #tpu.memory_space<vmem>>, vector<128x128xf32>
    %cst = arith.constant dense<0.000000e+00> : vector<8x128xf32>
    %2 = tpu.matmul %0, %1, %cst {dimension_numbers = #tpu.dot_dimension_numbers<[1], [0], [0], [1], [0, 0, 1, 1], [], []>} : vector<8x128xf32>, vector<128x128xf32>, vector<8x128xf32> -> vector<8x128xf32>
    %c0_3 = arith.constant 0 : index
    %c0_4 = arith.constant 0 : index
    %3 = vector.load %arg2[%c0_3, %c0_4] : memref<1x128xf32, #tpu.memory_space<vmem>>, vector<1x128xf32>
    %4 = vector.broadcast %3 : vector<1x128xf32> to vector<8x128xf32>
    %5 = arith.addf %2, %4 : vector<8x128xf32>
    %cst_5 = arith.constant dense<0.000000e+00> : vector<128xf32>
    %6 = vector.multi_reduction <add>, %5, %cst_5 [0] : vector<8x128xf32> to vector<128xf32>
    %7 = vector.shape_cast %6 : vector<128xf32> to vector<1x128xf32>
    %cst_6 = arith.constant 8.000000e+00 : f32
    %8 = vector.broadcast %cst_6 : f32 to vector<1x128xf32>
    %9 = arith.divf %7, %8 : vector<1x128xf32>
    %c0_7 = arith.constant 0 : index
    %c0_8 = arith.constant 0 : index
    %10 = vector.load %arg5[%c0_7, %c0_8] : memref<1x128xf32, #tpu.memory_space<vmem>>, vector<1x128xf32>
    %11 = arith.mulf %9, %10 : vector<1x128xf32>
    %12 = vector.broadcast %11 : vector<1x128xf32> to vector<8x128xf32>
    %13 = arith.subf %5, %12 : vector<8x128xf32>
    %14 = arith.mulf %13, %13 : vector<8x128xf32>
    %cst_9 = arith.constant dense<0.000000e+00> : vector<128xf32>
    %15 = vector.multi_reduction <add>, %14, %cst_9 [0] : vector<8x128xf32> to vector<128xf32>
    %16 = vector.shape_cast %15 : vector<128xf32> to vector<1x128xf32>
    %cst_10 = arith.constant 8.000000e+00 : f32
    %17 = vector.broadcast %cst_10 : f32 to vector<1x128xf32>
    %18 = arith.divf %16, %17 : vector<1x128xf32>
    %c0_11 = arith.constant 0 : index
    %c0_12 = arith.constant 0 : index
    %19 = vector.load %arg3[%c0_11, %c0_12] : memref<1x128xf32, #tpu.memory_space<vmem>>, vector<1x128xf32>
    %20 = vector.broadcast %19 : vector<1x128xf32> to vector<8x128xf32>
    %21 = arith.mulf %20, %13 : vector<8x128xf32>
    %cst_13 = arith.constant 9.99999974E-6 : f32
    %22 = vector.broadcast %cst_13 : f32 to vector<1x128xf32>
    %23 = arith.addf %18, %22 : vector<1x128xf32>
    %24 = math.rsqrt %23 : vector<1x128xf32>
    %25 = vector.broadcast %24 : vector<1x128xf32> to vector<8x128xf32>
    %26 = arith.mulf %21, %25 : vector<8x128xf32>
    %c0_14 = arith.constant 0 : index
    %c0_15 = arith.constant 0 : index
    %27 = vector.load %arg4[%c0_14, %c0_15] : memref<1x128xf32, #tpu.memory_space<vmem>>, vector<1x128xf32>
    %28 = vector.broadcast %27 : vector<1x128xf32> to vector<8x128xf32>
    %29 = arith.addf %26, %28 : vector<8x128xf32>
    %cst_16 = arith.constant 0.000000e+00 : f32
    %30 = vector.broadcast %cst_16 : f32 to vector<8x128xf32>
    %31 = arith.maximumf %29, %30 : vector<8x128xf32>
    %c0_17 = arith.constant 0 : index
    %c0_18 = arith.constant 0 : index
    %32 = vector.load %arg6[%c0_17, %c0_18] : memref<8x128xf32, #tpu.memory_space<vmem>>, vector<8x128xf32>
    tpu.vector_store %arg6[%c0_17, %c0_18], %31 {strides = array<i32>} : memref<8x128xf32, #tpu.memory_space<vmem>>, vector<8x128xf32>,
    return
  }
}

</mosaic_0001>

<bundles_post_ra>
// kernel: tpu_custom_call.1
= control target key start
LH: loop header
LB: loop body
LE: loop exit
PB: predicated region body
PF: predicated region fallthrough
CT: control target
= control target key end

     0   :  { %11 = vsyncpa [#allocation3], 0  ;;  %s316_s0 = inlined_call_operand.hbm [shape: f32[8,128], index: 0, kind: input, shape index: {}]   ;;  %s317_s1 = inlined_call_operand.hbm [shape: f32[128,128], index: 1, kind: input, shape index: {}]   ;;  %s318_s2 = inlined_call_operand.vmem [shape: f32[1,128], index: 2, kind: input, shape index: {}]   ;;  %s319_s3 = inlined_call_operand.vmem [shape: f32[1,128], index: 3, kind: input, shape index: {}]   ;;  %s320_s4 = inlined_call_operand.vmem [shape: f32[1,128], index: 4, kind: input, shape index: {}]   ;;  %s321_s5 = inlined_call_operand.vmem [shape: f32[1,128], index: 5, kind: input, shape index: {}]   ;;  %s322_s6 = inlined_call_operand.hbm [shape: f32[8,128], index: 6, kind: output, shape index: {}]  }
   0x1   :  { %12 = vsyncpa [#allocation6], 0 }
   0x2   :  { %13 = vsyncpa [#allocation4], 0  ;;  %s19_s23 = sshll.u32 %s316_s0, 4  ;;  %s254_s24 = smov [#allocation2]   ;;  %s20_s23 = int_to_ptr.hbm [resolvable:$true] %s19_s23 }
   0x3   :  { %s21_s25 = sshll.u32 %s254_s24, 4  ;;  %s29_s28 = sshll.u32 %s317_s1, 4  ;;  %s22_s25 = int_to_ptr.vmem [resolvable:$true] %s21_s25  ;;  %s30_s28 = int_to_ptr.hbm [resolvable:$true] %s29_s28 }
   0x4   :  { %24 = dma.hbm_to_vmem [thread:$0]  %s20_s23, 128, %s22_s25, [#allocation3]  }
   0x5   :  { %s255_s29 = smov [#allocation5]   ;;  %s256_s7 = smov 128  }
   0x6   :  { %s31_s30 = sshll.u32 %s255_s29, 4  ;;  %s257_s8 = smov 8   ;;  %s32_s30 = int_to_ptr.vmem [resolvable:$true] %s31_s30 }
   0x7   :  { %37 = dma.hbm_to_vmem [thread:$0]  %s30_s28, 2048, %s32_s30, [#allocation6], %s256_s7, %s256_s7, %s257_s8  }
   0x8   :  { %248 = dma.done.wait [#allocation3], 128  }
   0x9   :  { %249 = vsyncadd [#allocation3], 4294967168 }
   0xa   :  { %250 = dma.done.wait [#allocation6], 2048  }
   0xb   :  { %251 = vsyncadd [#allocation6], 4294965248  ;;  %v70_v0 = vld [vmem:[#allocation5 + $0x78] sm:$0xff]  ;;  %v69_v1 = vld [vmem:[#allocation5 + $0x70] sm:$0xff]  ;;  %v258_v17 = vmov 8.0   ;;  %s259_s13 = smov [#allocation7]  }
   0xc   :  { %75 = vmatpush.msra.mxu0 %v70_v0  ;;  %v68_v2 = vld [vmem:[#allocation5 + $0x68] sm:$0xff]  ;;  %v67_v3 = vld [vmem:[#allocation5 + $0x60] sm:$0xff]  ;;  %v66_v4 = vld [vmem:[#allocation5 + $0x58] sm:$0xff]  ;;  %172 = vrcp.f32 %v258_v17  ;;  %s150_s14 = sshll.u32 %s259_s13, 4  ;;  %s152_s17 = sshll.u32 %s322_s6, 4  ;;  %s151_s14 = int_to_ptr.vmem [resolvable:$true] %s150_s14  ;;  %s153_s17 = int_to_ptr.hbm [resolvable:$true] %s152_s17 }
   0xd   :  { %v65_v5 = vld [vmem:[#allocation5 + $0x50] sm:$0xff]  ;;  %v64_v6 = vld [vmem:[#allocation5 + $0x48] sm:$0xff]  ;;  %v63_v7 = vld [vmem:[#allocation5 + $0x40] sm:$0xff] }
   0xe   :  { %76 = vmatpush.msra.mxu0 %v69_v1  ;;  %v62_v8 = vld [vmem:[#allocation5 + $0x38] sm:$0xff]  ;;  %v61_v9 = vld [vmem:[#allocation5 + $0x30] sm:$0xff]  ;;  %v60_v10 = vld [vmem:[#allocation5 + $0x28] sm:$0xff] }
   0xf   :  { %v59_v11 = vld [vmem:[#allocation5 + $0x20] sm:$0xff]  ;;  %v58_v12 = vld [vmem:[#allocation5 + $0x18] sm:$0xff]  ;;  %v57_v13 = vld [vmem:[#allocation5 + $0x10] sm:$0xff] }
  0x10   :  { %77 = vmatpush.msra.mxu0 %v68_v2  ;;  %v56_v14 = vld [vmem:[#allocation5 + $0x8] sm:$0xff]  ;;  %v55_v15 = vld [vmem:[#allocation5] sm:$0xff]  ;;  %v54_v16 = vld [vmem:[#allocation2] sm:$0xff] }
  0x11   :  { %v169_v20 = vld [vmem:[%s318_s2] ss:$0 sm:$0xff] }
  0x12   :  { %78 = vmatpush.msra.mxu0 %v67_v3  ;;  %v173_v18 = vpop.eup %172  ;;  %v109_v33 = vld [vmem:[%s321_s5] sm:$0x1] }
  0x13   :  { %v102_v19 = vmul.f32 8.0, %v173_v18  ;;  %vm106_vm0 = vweird.f32 %v173_v18  ;;  %v170_v51 = vld [vmem:[%s319_s3] ss:$0 sm:$0xff] }
  0x14   :  { %79 = vmatpush.msra.mxu0 %v66_v4  ;;  %v171_v55 = vld [vmem:[%s320_s4] ss:$0 sm:$0xff] }
  0x15   :  { %v103_v22 = vsub.f32 1.0, %v102_v19 }
  0x16   :  { %80 = vmatpush.msra.mxu0 %v65_v5 }
  0x17   :  { %v104_v25 = vmul.f32 %v173_v18, %v103_v22 }
  0x18   :  { %81 = vmatpush.msra.mxu0 %v64_v6 }
  0x19   :  { %v105_v28 = vadd.f32 %v173_v18, %v104_v25 }
  0x1a   :  { %82 = vmatpush.msra.mxu0 %v63_v7 }
  0x1b   :  { %v107_v31 = vsel %vm106_vm0, %v173_v18, %v105_v28 }
  0x1c   :  { %83 = vmatpush.msra.mxu0 %v62_v8 }
  0x1e   :  { %84 = vmatpush.msra.mxu0 %v61_v9 }
  0x20   :  { %85 = vmatpush.msra.mxu0 %v60_v10 }
  0x22   :  { %86 = vmatpush.msra.mxu0 %v59_v11 }
  0x24   :  { %87 = vmatpush.msra.mxu0 %v58_v12 }
  0x26   :  { %88 = vmatpush.msra.mxu0 %v57_v13 }
  0x28   :  { %89 = vmatpush.msra.mxu0 %v56_v14 }
  0x2a   :  { %90 = vmatpush.msra.mxu0 %v55_v15 }
  0x2b   :  { %91 = vmatmul.f32.vlgmr.msra.gmra.mxu0 %v54_v16 }
  0xa8   :  { %v92_v21 = vpop.f32.mrf.mxu0 }
  0xa9   :  { %v93_v23 = vadd.f32 %v169_v20, %v92_v21 }
  0xab   :  { %v95_v24 = vrot.slane %v93_v23, 4 }
  0xad   :  { %v96_v26 = vadd.f32 %v95_v24, %v93_v23 }
  0xaf   :  { %v97_v27 = vrot.slane %v96_v26, 2 }
  0xb1   :  { %v98_v29 = vadd.f32 %v97_v27, %v96_v26 }
  0xb3   :  { %v99_v30 = vrot.slane %v98_v29, 1 }
  0xb5   :  { %v100_v32 = vadd.f32 %v99_v30, %v98_v29 }
  0xb7   :  { %v108_v34 = vmul.f32 %v107_v31, %v100_v32 }
  0xb9   :  { %v110_v35 = vmul.f32 %v109_v33, %v108_v34 }
  0xbb   :  { %v111_v36 = vperm.slane %v110_v35, 0 }
  0xbd   :  { %v112_v37 = vsub.f32 %v93_v23, %v111_v36 }
  0xbf   :  { %v113_v38 = vmul.f32 %v112_v37, %v112_v37  ;;  %v125_v54 = vmul.f32 %v170_v51, %v112_v37 }
  0xc1   :  { %v114_v39 = vrot.slane %v113_v38, 4 }
  0xc3   :  { %v115_v40 = vadd.f32 %v114_v39, %v113_v38 }
  0xc5   :  { %v116_v41 = vrot.slane %v115_v40, 2 }
  0xc7   :  { %v117_v42 = vadd.f32 %v116_v41, %v115_v40 }
  0xc9   :  { %v118_v43 = vrot.slane %v117_v42, 1 }
  0xcb   :  { %v119_v44 = vadd.f32 %v118_v43, %v117_v42 }
  0xcd   :  { %v120_v45 = vmul.f32 %v119_v44, %v107_v31 }
  0xcf   :  { %v126_v46 = vadd.f32 1e-05, %v120_v45 }
  0xd1   :  { %174 = vrsqrt.f32 %v126_v46  ;;  %vm133_vm2 = vweird.f32 %v126_v46 }
  0xd7   :  { %v175_v47 = vpop.eup %174 }
  0xd8   :  { %v128_v48 = vmul.f32 %v175_v47, %v126_v46  ;;  %vm134_vm1 = vweird.f32 %v175_v47 }
  0xd9   :  { %vm135_vm3 = vmor %vm133_vm2, %vm134_vm1 }
  0xda   :  { %v129_v49 = vmul.f32 %v175_v47, %v128_v48 }
  0xdc   :  { %v130_v50 = vmul.f32 0.5, %v129_v49 }
  0xde   :  { %v131_v52 = vsub.f32 1.5, %v130_v50 }
  0xe0   :  { %v132_v53 = vmul.f32 %v175_v47, %v131_v52 }
  0xe2   :  { %v136_v56 = vsel %vm135_vm3, %v175_v47, %v132_v53 }
  0xe3   :  { %v137_v57 = vmul.f32 %v136_v56, %v125_v54 }
  0xe5   :  { %v142_v58 = vadd.f32 %v171_v55, %v137_v57 }
  0xe7   :  { %v143_v59 = vmax.f32 %v142_v58, 0.0 }
  0xe9   :  { %144 = vst [vmem:[#allocation7] sm:$0xff] %v143_v59 }
  0xea   :  { %155 = dma.vmem_to_hbm [thread:$0]  %s151_s14, 128, %s153_s17, [#allocation4]  }
  0xeb   :  { %252 = dma.done.wait [#allocation4], 128  }
  0xec   :  { %253 = vsyncadd [#allocation4], 4294967168 }
  0xed   :  { %160 = vsyncpa [#allocation3], 1 }
  0xee   :  { %161 = vsyncpa [#allocation6], 1 }
  0xef   :  { %162 = vsyncpa [#allocation4], 1 }

</bundles_post_ra>
